<compile_context>
chip_gen: v7x
topology: tpu7x:2x2x1
jax: 0.10.0
libtpu: 0.0.40
codegen_flags: <defaults>
</compile_context>

<pallas_src>
import jax
import jax.numpy as jnp
from jax.experimental import pallas as pl
from jax.experimental.pallas import tpu as pltpu

OUT_PAD = 128  # lane-dense padding for the tiny fc output (output_size=2)


def gru_seq_kernel(x_ref, h0_ref, wcat_ref, whfc_ref, b_ref, out_ref, hid_ref):
    """One grid step = one GRU time step.  Weights resident; hidden carried
    in the grid-resident `hid_ref` output block."""
    H = h0_ref.shape[1]
    t = pl.program_id(0)

    @pl.when(t == 0)
    def _():
        hid_ref[...] = h0_ref[...]

    x = x_ref[0]                                   # [B, I]  f32
    h = hid_ref[...]                               # [B, H]  f32

    # Fused gate matmul: cat(x,h) @ [[Wzx|Wrx|Wx],[Wzh|Wrh|0]]  -> [B, 3H]
    xh_bf = jnp.concatenate([x, h], axis=1).astype(jnp.bfloat16)
    gates = jnp.dot(xh_bf, wcat_ref[...], preferred_element_type=jnp.float32)

    z_t = jax.nn.sigmoid(gates[:, :H] + b_ref[:, :H])
    r_t = jax.nn.sigmoid(gates[:, H:2 * H] + b_ref[:, H:2 * H])

    # h_tilde = tanh(x@Wx + (r*h)@Wh + bw); x@Wx already in gates[:, 2H:3H].
    rh_bf = (r_t * h).astype(jnp.bfloat16)
    cand = (gates[:, 2 * H:3 * H]
            + jnp.dot(rh_bf, whfc_ref[:, :H], preferred_element_type=jnp.float32)
            + b_ref[:, 2 * H:3 * H])
    h_tilde = jnp.tanh(cand)

    # hidden = (1-z)*h + z*h_tilde  ==  h + z*(h_tilde - h)
    hidden = h + z_t * (h_tilde - h)

    # output = sigmoid(hidden @ Wfc + bfc), fc pre-padded to 128 lanes.
    out = jax.nn.sigmoid(
        jnp.dot(hidden.astype(jnp.bfloat16), whfc_ref[:, H:],
                preferred_element_type=jnp.float32)
        + b_ref[:, 3 * H:])

    hid_ref[...] = hidden
    out_ref[0] = out.astype(out_ref.dtype)


def make_gru_params(key, input_size, hidden_size, output_size):
    """Deterministic init mimicking nn.Linear (uniform +-1/sqrt(fan_in))."""
    ks = jax.random.split(key, 8)
    fan_cat = input_size + hidden_size

    def lin(kw, kb, fan_in, fan_out):
        bound = 1.0 / jnp.sqrt(jnp.float32(fan_in))
        w = jax.random.uniform(kw, (fan_in, fan_out), jnp.float32, -bound, bound)
        b = jax.random.uniform(kb, (1, fan_out), jnp.float32, -bound, bound)
        return w, b

    w_z, b_z = lin(ks[0], ks[1], fan_cat, hidden_size)   # [I+H, H]
    w_r, b_r = lin(ks[2], ks[3], fan_cat, hidden_size)
    w_h, b_h = lin(ks[4], ks[5], fan_cat, hidden_size)
    w_fc, b_fc = lin(ks[6], ks[7], hidden_size, output_size)

    return dict(
        wzx=w_z[:input_size], wzh=w_z[input_size:], bz=b_z,
        wrx=w_r[:input_size], wrh=w_r[input_size:], br=b_r,
        wx=w_h[:input_size],  wh=w_h[input_size:],  bw=b_h,
        wfc=w_fc, bfc=b_fc,
    )


def pack_gru_params(params, input_size, hidden_size, output_size,
                    out_pad=OUT_PAD):
    """One-time packing/padding of weights into the kernel's 3 arrays."""
    I, H = input_size, hidden_size
    # Fused gate weight: [[Wzx|Wrx|Wx],[Wzh|Wrh|0_{HxH}]]  -> [I+H, 3H] bf16.
    top = jnp.concatenate([params["wzx"], params["wrx"], params["wx"]], axis=1)
    bot = jnp.concatenate([params["wzh"], params["wrh"],
                           jnp.zeros((H, H), jnp.float32)], axis=1)
    w_cat = jnp.concatenate([top, bot], axis=0).astype(jnp.bfloat16)
    # Candidate Wh and lane-padded fc weight packed together: [H, H+out_pad].
    wfc_p = jnp.zeros((H, out_pad), jnp.float32).at[:, :output_size].set(params["wfc"])
    wh_fc = jnp.concatenate([params["wh"], wfc_p], axis=1).astype(jnp.bfloat16)
    # All biases in one f32 row: [1, 3H + out_pad].
    bfc_p = jnp.zeros((1, out_pad), jnp.float32).at[:, :output_size].set(params["bfc"])
    b_all = jnp.concatenate([params["bz"], params["br"], params["bw"], bfc_p],
                            axis=1)
    return dict(w_cat=w_cat, wh_fc=wh_fc, b_all=b_all,
                input_size=I, hidden_size=H, output_size=output_size)


def ex_gru_sequence(xs, h0, packed):
    """Run the GRU cell over a whole sequence inside one pallas_call.

    xs: [T, B, I] f32, h0: [B, H] f32.
    Returns (outputs [T, B, output_size], final hidden [B, H])."""
    T, B, I = xs.shape
    H = h0.shape[1]

    outs_padded, h_final = pl.pallas_call(
        gru_seq_kernel,
        out_shape=(jax.ShapeDtypeStruct((T, B, OUT_PAD), jnp.float32),
                   jax.ShapeDtypeStruct((B, H), jnp.float32)),
        grid=(T,),
        in_specs=[
            pl.BlockSpec((1, B, I), lambda t: (t, 0, 0)),          # x_t
            pl.BlockSpec((B, H), lambda t: (0, 0)),                # h0 (resident)
            pl.BlockSpec((I + H, 3 * H), lambda t: (0, 0)),        # w_cat (resident)
            pl.BlockSpec((H, H + OUT_PAD), lambda t: (0, 0)),      # wh|fc (resident)
            pl.BlockSpec((1, 3 * H + OUT_PAD), lambda t: (0, 0)),  # biases (resident)
        ],
        out_specs=(
            pl.BlockSpec((1, B, OUT_PAD), lambda t: (t, 0, 0)),    # per-step output
            pl.BlockSpec((B, H), lambda t: (0, 0)),                # hidden carry
        ),
        compiler_params=pltpu.CompilerParams(
            dimension_semantics=("arbitrary",)),                   # recurrence
    )(xs, h0, packed["w_cat"], packed["wh_fc"], packed["b_all"])

    return outs_padded[..., :packed["output_size"]], h_final


def ex_gru_forward(x, hidden_state, packed):
    """Single GRU step matching ExGRU.forward(x, hidden_state)."""
    outs, hidden = ex_gru_sequence(x[None], hidden_state, packed)
    return outs[0], hidden


def ex_gru_step_ref(x, h, params):
    """Pure-JAX reference mirroring the PyTorch forward (bf16 matmul operands
    to match the kernel's MXU precision; everything else f32)."""
    bf = jnp.bfloat16

    def mm(a, w):
        return jnp.dot(a.astype(bf), w.astype(bf),
                       preferred_element_type=jnp.float32)

    cat1 = jnp.concatenate([x, h], axis=1)
    wz = jnp.concatenate([params["wzx"], params["wzh"]], axis=0)
    wr = jnp.concatenate([params["wrx"], params["wrh"]], axis=0)
    w = jnp.concatenate([params["wx"], params["wh"]], axis=0)
    z = jax.nn.sigmoid(mm(cat1, wz) + params["bz"])
    r = jax.nn.sigmoid(mm(cat1, wr) + params["br"])
    cat2 = jnp.concatenate([x, r * h], axis=1)
    h_tilde = jnp.tanh(mm(cat2, w) + params["bw"])
    hidden = (1 - z) * h + z * h_tilde
    out = jax.nn.sigmoid(mm(hidden, params["wfc"]) + params["bfc"])
    return out, hidden


if __name__ == "__main__":
    input_size = 32
    hidden_size = 128
    output_size = 2
    batch = 8
    seq_len = 8

    key = jax.random.PRNGKey(0)
    k_par, k_x, k_h, k_seq = jax.random.split(key, 4)

    params = make_gru_params(k_par, input_size, hidden_size, output_size)
    packed = pack_gru_params(params, input_size, hidden_size, output_size)

    # --- single step (exactly the module's forward semantics) ---
    x = jax.random.normal(k_x, (batch, input_size), jnp.float32)
    h0 = jax.random.normal(k_h, (batch, hidden_size), jnp.float32)

    out, hidden = ex_gru_forward(x, h0, packed)
    out = jax.block_until_ready(out)
    hidden = jax.block_until_ready(hidden)

    ref_out, ref_hidden = ex_gru_step_ref(x, h0, params)
    assert out.shape == (batch, output_size)
    assert hidden.shape == (batch, hidden_size)
    assert jnp.allclose(out, ref_out, atol=2e-2, rtol=2e-2)
    assert jnp.allclose(hidden, ref_hidden, atol=2e-2, rtol=2e-2)

    # --- in-kernel time loop over a short sequence (resident weights) ---
    xs = jax.random.normal(k_seq, (seq_len, batch, input_size), jnp.float32)
    outs, h_final = ex_gru_sequence(xs, h0, packed)
    outs = jax.block_until_ready(outs)
    h_final = jax.block_until_ready(h_final)

    h_ref = h0
    ref_outs = []
    for t in range(seq_len):
        o_t, h_ref = ex_gru_step_ref(xs[t], h_ref, params)
        ref_outs.append(o_t)
    ref_outs = jnp.stack(ref_outs)

    assert outs.shape == (seq_len, batch, output_size)
    assert h_final.shape == (batch, hidden_size)
    assert jnp.allclose(outs, ref_outs, atol=3e-2, rtol=3e-2)
    assert jnp.allclose(h_final, h_ref, atol=3e-2, rtol=3e-2)

    print("KERNEL_OK")
</pallas_src>

<mosaic_0001>
module attributes {stable_mosaic.version = 11 : i64} {
  func.func @gru_seq_kernel(%arg0: i32, %arg1: memref<1x8x32xf32, #tpu.memory_space<vmem>>, %arg2: memref<8x128xf32, #tpu.memory_space<vmem>>, %arg3: memref<160x384xbf16, #tpu.memory_space<vmem>>, %arg4: memref<128x256xbf16, #tpu.memory_space<vmem>>, %arg5: memref<1x512xf32, #tpu.memory_space<vmem>>, %arg6: memref<1x8x128xf32, #tpu.memory_space<vmem>>, %arg7: memref<8x128xf32, #tpu.memory_space<vmem>>) attributes {dimension_semantics = [#tpu.dimension_semantics<arbitrary>], iteration_bounds = array<i64: 1>, scalar_prefetch = 0 : i64, scratch_operands = 0 : i64, tpu.core_type = #tpu.core_type<tc>, window_params = [{transform_indices = @transform_0, window_bounds = array<i64: 1, 8, 32>}, {pipeline_mode = #tpu.pipeline_mode<synchronous>, transform_indices = @transform_1, window_bounds = array<i64: 8, 128>}, {pipeline_mode = #tpu.pipeline_mode<synchronous>, transform_indices = @transform_2, window_bounds = array<i64: 160, 384>}, {pipeline_mode = #tpu.pipeline_mode<synchronous>, transform_indices = @transform_3, window_bounds = array<i64: 128, 256>}, {pipeline_mode = #tpu.pipeline_mode<synchronous>, transform_indices = @transform_4, window_bounds = array<i64: 1, 512>}, {transform_indices = @transform_5, window_bounds = array<i64: 1, 8, 128>}, {pipeline_mode = #tpu.pipeline_mode<synchronous>, transform_indices = @transform_6, window_bounds = array<i64: 8, 128>}]} {
    %c0_i32 = arith.constant 0 : i32
    %0 = arith.cmpi eq, %arg0, %c0_i32 : i32
    %1 = arith.extui %0 : i1 to i32
    %c0_i32_0 = arith.constant 0 : i32
    %2 = arith.cmpi ne, %1, %c0_i32_0 : i32
    scf.if %2 {
      %c0_26 = arith.constant 0 : index
      %c0_27 = arith.constant 0 : index
      %56 = vector.load %arg2[%c0_26, %c0_27] : memref<8x128xf32, #tpu.memory_space<vmem>>, vector<8x128xf32>
      %c0_28 = arith.constant 0 : index
      %c0_29 = arith.constant 0 : index
      %57 = vector.load %arg7[%c0_28, %c0_29] : memref<8x128xf32, #tpu.memory_space<vmem>>, vector<8x128xf32>
      tpu.vector_store %arg7[%c0_28, %c0_29], %56 {strides = array<i32>} : memref<8x128xf32, #tpu.memory_space<vmem>>, vector<8x128xf32>,
    } else {
    }
    %c0 = arith.constant 0 : index
    %c0_1 = arith.constant 0 : index
    %c0_2 = arith.constant 0 : index
    %3 = vector.load %arg1[%c0, %c0_1, %c0_2] : memref<1x8x32xf32, #tpu.memory_space<vmem>>, vector<1x8x32xf32>
    %4 = vector.shape_cast %3 : vector<1x8x32xf32> to vector<8x32xf32>
    %c0_3 = arith.constant 0 : index
    %c0_4 = arith.constant 0 : index
    %5 = vector.load %arg7[%c0_3, %c0_4] : memref<8x128xf32, #tpu.memory_space<vmem>>, vector<8x128xf32>
    %6 = tpu.concatenate %4, %5 in 1 : vector<8x32xf32>, vector<8x128xf32> -> vector<8x160xf32>
    %7 = arith.truncf %6 : vector<8x160xf32> to vector<8x160xbf16>
    %c0_5 = arith.constant 0 : index
    %c0_6 = arith.constant 0 : index
    %8 = vector.load %arg3[%c0_5, %c0_6] : memref<160x384xbf16, #tpu.memory_space<vmem>>, vector<160x384xbf16>
    %cst = arith.constant dense<0.000000e+00> : vector<8x384xf32>
    %9 = tpu.matmul %7, %8, %cst {dimension_numbers = #tpu.dot_dimension_numbers<[1], [0], [0], [1], [0, 0, 1, 1], [], []>} : vector<8x160xbf16>, vector<160x384xbf16>, vector<8x384xf32> -> vector<8x384xf32>
    %10 = vector.extract_strided_slice %9 {offsets = [0, 0], sizes = [8, 128], strides = [1, 1]} : vector<8x384xf32> to vector<8x128xf32>
    %c0_7 = arith.constant 0 : index
    %c0_8 = arith.constant 0 : index
    %11 = vector.load %arg5[%c0_7, %c0_8] : memref<1x512xf32, #tpu.memory_space<vmem>>, vector<1x128xf32>
    %12 = vector.broadcast %11 : vector<1x128xf32> to vector<8x128xf32>
    %13 = arith.addf %10, %12 : vector<8x128xf32>
    %14 = arith.negf %13 : vector<8x128xf32>
    %15 = math.exp %14 : vector<8x128xf32>
    %cst_9 = arith.constant 1.000000e+00 : f32
    %16 = vector.broadcast %cst_9 : f32 to vector<8x128xf32>
    %17 = arith.addf %16, %15 : vector<8x128xf32>
    %18 = arith.divf %16, %17 : vector<8x128xf32>
    %19 = vector.extract_strided_slice %9 {offsets = [0, 128], sizes = [8, 128], strides = [1, 1]} : vector<8x384xf32> to vector<8x128xf32>
    %c0_10 = arith.constant 0 : index
    %c128 = arith.constant 128 : index
    %20 = vector.load %arg5[%c0_10, %c128] : memref<1x512xf32, #tpu.memory_space<vmem>>, vector<1x128xf32>
    %21 = vector.broadcast %20 : vector<1x128xf32> to vector<8x128xf32>
    %22 = arith.addf %19, %21 : vector<8x128xf32>
    %23 = arith.negf %22 : vector<8x128xf32>
    %24 = math.exp %23 : vector<8x128xf32>
    %cst_11 = arith.constant 1.000000e+00 : f32
    %25 = vector.broadcast %cst_11 : f32 to vector<8x128xf32>
    %26 = arith.addf %25, %24 : vector<8x128xf32>
    %27 = arith.divf %25, %26 : vector<8x128xf32>
    %28 = arith.mulf %27, %5 : vector<8x128xf32>
    %29 = arith.truncf %28 : vector<8x128xf32> to vector<8x128xbf16>
    %30 = vector.extract_strided_slice %9 {offsets = [0, 256], sizes = [8, 128], strides = [1, 1]} : vector<8x384xf32> to vector<8x128xf32>
    %c0_12 = arith.constant 0 : index
    %c0_13 = arith.constant 0 : index
    %31 = vector.load %arg4[%c0_12, %c0_13] : memref<128x256xbf16, #tpu.memory_space<vmem>>, vector<128x128xbf16>
    %cst_14 = arith.constant dense<0.000000e+00> : vector<8x128xf32>
    %32 = tpu.matmul %29, %31, %cst_14 {dimension_numbers = #tpu.dot_dimension_numbers<[1], [0], [0], [1], [0, 0, 1, 1], [], []>} : vector<8x128xbf16>, vector<128x128xbf16>, vector<8x128xf32> -> vector<8x128xf32>
    %33 = arith.addf %30, %32 : vector<8x128xf32>
    %c0_15 = arith.constant 0 : index
    %c256 = arith.constant 256 : index
    %34 = vector.load %arg5[%c0_15, %c256] : memref<1x512xf32, #tpu.memory_space<vmem>>, vector<1x128xf32>
    %35 = vector.broadcast %34 : vector<1x128xf32> to vector<8x128xf32>
    %36 = arith.addf %33, %35 : vector<8x128xf32>
    %37 = math.tanh %36 : vector<8x128xf32>
    %38 = arith.subf %37, %5 : vector<8x128xf32>
    %39 = arith.mulf %18, %38 : vector<8x128xf32>
    %40 = arith.addf %5, %39 : vector<8x128xf32>
    %41 = arith.truncf %40 : vector<8x128xf32> to vector<8x128xbf16>
    %c0_16 = arith.constant 0 : index
    %c128_17 = arith.constant 128 : index
    %42 = vector.load %arg4[%c0_16, %c128_17] : memref<128x256xbf16, #tpu.memory_space<vmem>>, vector<128x128xbf16>
    %cst_18 = arith.constant dense<0.000000e+00> : vector<8x128xf32>
    %43 = tpu.matmul %41, %42, %cst_18 {dimension_numbers = #tpu.dot_dimension_numbers<[1], [0], [0], [1], [0, 0, 1, 1], [], []>} : vector<8x128xbf16>, vector<128x128xbf16>, vector<8x128xf32> -> vector<8x128xf32>
    %c0_19 = arith.constant 0 : index
    %c384 = arith.constant 384 : index
    %44 = vector.load %arg5[%c0_19, %c384] : memref<1x512xf32, #tpu.memory_space<vmem>>, vector<1x128xf32>
    %45 = vector.broadcast %44 : vector<1x128xf32> to vector<8x128xf32>
    %46 = arith.addf %43, %45 : vector<8x128xf32>
    %47 = arith.negf %46 : vector<8x128xf32>
    %48 = math.exp %47 : vector<8x128xf32>
    %cst_20 = arith.constant 1.000000e+00 : f32
    %49 = vector.broadcast %cst_20 : f32 to vector<8x128xf32>
    %50 = arith.addf %49, %48 : vector<8x128xf32>
    %51 = arith.divf %49, %50 : vector<8x128xf32>
    %c0_21 = arith.constant 0 : index
    %c0_22 = arith.constant 0 : index
    %52 = vector.load %arg7[%c0_21, %c0_22] : memref<8x128xf32, #tpu.memory_space<vmem>>, vector<8x128xf32>
    tpu.vector_store %arg7[%c0_21, %c0_22], %40 {strides = array<i32>} : memref<8x128xf32, #tpu.memory_space<vmem>>, vector<8x128xf32>,
    %c0_23 = arith.constant 0 : index
    %c0_24 = arith.constant 0 : index
    %c0_25 = arith.constant 0 : index
    %53 = vector.load %arg6[%c0_23, %c0_24, %c0_25] : memref<1x8x128xf32, #tpu.memory_space<vmem>>, vector<1x8x128xf32>
    %54 = vector.shape_cast %53 : vector<1x8x128xf32> to vector<8x128xf32>
    %55 = vector.shape_cast %51 : vector<8x128xf32> to vector<1x8x128xf32>
    tpu.vector_store %arg6[%c0_23, %c0_24, %c0_25], %55 {strides = array<i32>} : memref<1x8x128xf32, #tpu.memory_space<vmem>>, vector<1x8x128xf32>,
    return
  }
  func.func @transform_0(%arg0: i32) -> (i32, i32, i32) {
    %c0_i32 = arith.constant 0 : i32
    %c0_i32_0 = arith.constant 0 : i32
    %c0_i32_1 = arith.constant 0 : i32
    return %arg0, %c0_i32, %c0_i32_0 : i32, i32, i32
  }
  func.func @transform_1(%arg0: i32) -> (i32, i32) {
    %c0_i32 = arith.constant 0 : i32
    %c0_i32_0 = arith.constant 0 : i32
    %c0_i32_1 = arith.constant 0 : i32
    return %c0_i32, %c0_i32_0 : i32, i32
  }
  func.func @transform_2(%arg0: i32) -> (i32, i32) {
    %c0_i32 = arith.constant 0 : i32
    %c0_i32_0 = arith.constant 0 : i32
    %c0_i32_1 = arith.constant 0 : i32
    return %c0_i32, %c0_i32_0 : i32, i32
  }
  func.func @transform_3(%arg0: i32) -> (i32, i32) {
    %c0_i32 = arith.constant 0 : i32
    %c0_i32_0 = arith.constant 0 : i32
    %c0_i32_1 = arith.constant 0 : i32
    return %c0_i32, %c0_i32_0 : i32, i32
  }
  func.func @transform_4(%arg0: i32) -> (i32, i32) {
    %c0_i32 = arith.constant 0 : i32
    %c0_i32_0 = arith.constant 0 : i32
    %c0_i32_1 = arith.constant 0 : i32
    return %c0_i32, %c0_i32_0 : i32, i32
  }
  func.func @transform_5(%arg0: i32) -> (i32, i32, i32) {
    %c0_i32 = arith.constant 0 : i32
    %c0_i32_0 = arith.constant 0 : i32
    %c0_i32_1 = arith.constant 0 : i32
    return %arg0, %c0_i32, %c0_i32_0 : i32, i32, i32
  }
  func.func @transform_6(%arg0: i32) -> (i32, i32) {
    %c0_i32 = arith.constant 0 : i32
    %c0_i32_0 = arith.constant 0 : i32
    %c0_i32_1 = arith.constant 0 : i32
    return %c0_i32, %c0_i32_0 : i32, i32
  }
}

</mosaic_0001>

<bundles_post_ra>
// kernel: tpu_custom_call.1
= control target key start
LH: loop header
LB: loop body
LE: loop exit
PB: predicated region body
PF: predicated region fallthrough
CT: control target
= control target key end

     0   :  { %12 = vsyncpa [#allocation3], 0  ;;  %s1180_s0 = inlined_call_operand.hbm [shape: f32[1,8,32], index: 0, kind: input, shape index: {}]   ;;  %s1181_s1 = inlined_call_operand.hbm [shape: f32[8,128], index: 1, kind: input, shape index: {}]   ;;  %s1182_s2 = inlined_call_operand.hbm [shape: bf16[160,384], index: 2, kind: input, shape index: {}]   ;;  %s1183_s3 = inlined_call_operand.hbm [shape: bf16[128,256], index: 3, kind: input, shape index: {}]   ;;  %s1184_s4 = inlined_call_operand.vmem [shape: f32[1,512], index: 4, kind: input, shape index: {}]   ;;  %s1185_s5 = inlined_call_operand.hbm [shape: f32[1,8,128], index: 5, kind: output, shape index: {0}]   ;;  %s1186_s6 = inlined_call_operand.hbm [shape: f32[8,128], index: 6, kind: output, shape index: {1}]  }
   0x1   :  { %13 = vsyncpa [#allocation6], 0 }
   0x2   :  { %14 = vsyncpa [#allocation9], 0 }
   0x3   :  { %15 = vsyncpa [#allocation4], 0 }
   0x4   :  { %16 = vsyncpa [#allocation12], 0  ;;  %s1013_s21 = smov [#allocation5]   ;;  %s1014_s23 = smov [#allocation2]  }
   0x5   :  { %s33_s22 = sshll.u32 %s1013_s21, 4  ;;  %s23_s24 = sshll.u32 %s1014_s23, 4  ;;  %s34_s22 = int_to_ptr.vmem [resolvable:$true] %s33_s22  ;;  %s24_s24 = int_to_ptr.vmem [resolvable:$true] %s23_s24 }
   0x6   :  { %s871_s27 = scalar_lea.hbm %s1181_s1, 128 }
   0x7   :  { %p872_p0 = scmp.ne.s32.totalorder %s1181_s1, %s871_s27  ;;  %p875_p1 = scmp.lt.u32.totalorder %s871_s27, %s1181_s1 }
   0x9   :  { %p877_p2 = pnand %p875_p1, %p872_p0 }
   0xb   :  { %880 = shalt.err (!%p877_p2)
}
   0xc   :  { %s881_s8 = scalar_lea.vmem %s34_s22, 128  ;;  %p886_p4 = scmp.lt.s32.totalorder %s34_s22, %s34_s22 }
   0xd   :  { %p882_p3 = scmp.ne.s32.totalorder %s34_s22, %s881_s8  ;;  %p887_p5 = scmp.lt.s32.totalorder %s881_s8, %s881_s8 }
   0xf   :  { %p888_p6 = por %p887_p5, %p886_p4 }
  0x11   :  { %p889_p7 = pnand %p888_p6, %p882_p3 }
  0x13   :  { %892 = shalt.err (!%p889_p7)
}
  0x14   :  { %36 = dma.hbm_to_vmem [thread:$0]  %s1181_s1, 128, %s34_s22, [#allocation6]  }
  0x15   :  { %s893_s13 = scalar_lea.hbm %s1180_s0, 128 }
  0x16   :  { %p894_p8 = scmp.ne.s32.totalorder %s1180_s0, %s893_s13  ;;  %p897_p9 = scmp.lt.u32.totalorder %s893_s13, %s1180_s0 }
  0x18   :  { %p899_p10 = pnand %p897_p9, %p894_p8 }
  0x1a   :  { %902 = shalt.err (!%p899_p10)
}
  0x1b   :  { %s903_s18 = scalar_lea.vmem %s24_s24, 128  ;;  %p908_p12 = scmp.lt.s32.totalorder %s24_s24, %s24_s24 }
  0x1c   :  { %p904_p11 = scmp.ne.s32.totalorder %s24_s24, %s903_s18  ;;  %p909_p13 = scmp.lt.s32.totalorder %s903_s18, %s903_s18 }
  0x1e   :  { %p910_p0 = por %p909_p13, %p908_p12 }
  0x20   :  { %p911_p1 = pnand %p910_p0, %p904_p11 }
  0x22   :  { %914 = shalt.err (!%p911_p1)
}
  0x23   :  { %26 = dma.hbm_to_vmem [thread:$0]  %s1180_s0, 128, %s24_s24, [#allocation3]  }
  0x24   :  { %s1015_s20 = smov [#allocation7]   ;;  %s915_s25 = scalar_lea.hbm %s1182_s2, 3840 }
  0x25   :  { %s42_s21 = sshll.u32 %s1015_s20, 4  ;;  %p916_p2 = scmp.ne.s32.totalorder %s1182_s2, %s915_s25  ;;  %s43_s21 = int_to_ptr.vmem [resolvable:$true] %s42_s21 }
  0x26   :  { %p919_p3 = scmp.lt.u32.totalorder %s915_s25, %s1182_s2 }
  0x28   :  { %p921_p4 = pnand %p919_p3, %p916_p2 }
  0x2a   :  { %924 = shalt.err (!%p921_p4)
}
  0x2b   :  { %s925_s30 = scalar_lea.vmem %s43_s21, 3840  ;;  %p930_p6 = scmp.lt.s32.totalorder %s43_s21, %s43_s21 }
  0x2c   :  { %p926_p5 = scmp.ne.s32.totalorder %s43_s21, %s925_s30  ;;  %p931_p7 = scmp.lt.s32.totalorder %s925_s30, %s925_s30 }
  0x2e   :  { %p932_p8 = por %p931_p7, %p930_p6 }
  0x30   :  { %p933_p9 = pnand %p932_p8, %p926_p5 }
  0x32   :  { %936 = shalt.err (!%p933_p9)
}
  0x33   :  { %s1016_s0 = smov 192   ;;  %s1017_s24 = smov 12  }
  0x34   :  { %48 = dma.hbm_to_vmem [thread:$0]  %s1182_s2, 3840, %s43_s21, [#allocation6], %s1016_s0, %s1016_s0, %s1017_s24  }
  0x35   :  { %s1018_s9 = smov [#allocation8]   ;;  %s937_s13 = scalar_lea.hbm %s1183_s3, 2048 }
  0x36   :  { %s54_s10 = sshll.u32 %s1018_s9, 4  ;;  %p938_p10 = scmp.ne.s32.totalorder %s1183_s3, %s937_s13  ;;  %s55_s10 = int_to_ptr.vmem [resolvable:$true] %s54_s10 }
  0x37   :  { %p941_p11 = scmp.lt.u32.totalorder %s937_s13, %s1183_s3 }
  0x39   :  { %p943_p12 = pnand %p941_p11, %p938_p10 }
  0x3b   :  { %946 = shalt.err (!%p943_p12)
}
  0x3c   :  { %s947_s18 = scalar_lea.vmem %s55_s10, 2048  ;;  %p952_p0 = scmp.lt.s32.totalorder %s55_s10, %s55_s10 }
  0x3d   :  { %p948_p13 = scmp.ne.s32.totalorder %s55_s10, %s947_s18  ;;  %p953_p1 = scmp.lt.s32.totalorder %s947_s18, %s947_s18 }
  0x3f   :  { %p954_p2 = por %p953_p1, %p952_p0 }
  0x41   :  { %p955_p3 = pnand %p954_p2, %p948_p13 }
  0x43   :  { %958 = shalt.err (!%p955_p3)
}
  0x44   :  { %s1019_s2 = smov 128   ;;  %s1020_s1 = smov 8  }
  0x45   :  { %60 = dma.hbm_to_vmem [thread:$0]  %s1183_s3, 2048, %s55_s10, [#allocation9], %s1019_s2, %s1019_s2, %s1020_s1  }
  0x46   :  { %1003 = dma.done.wait [#allocation3], 128  }
  0x47   :  { %1004 = vsyncadd [#allocation3], 4294967168 }
  0x48   :  { %1005 = dma.done.wait [#allocation6], 3968  }
  0x49   :  { %1006 = vsyncadd [#allocation6], 4294963328 }
  0x4a   :  { %1007 = dma.done.wait [#allocation9], 2048  }
  0x4b   :  { %1008 = vsyncadd [#allocation9], 4294965248  ;;  %v1021_v0 = vmov 0   ;;  %v1111_v1 = vld [vmem:[#allocation5] sm:$0xff]  ;;  %s1022_s21 = smov 32   ;;  %v82_v32 = vld [vmem:[#allocation2] sm:$0xff] }
  0x4c   :  { %336 = vmatprep.subr.bf16.mxu1 %v1021_v0  ;;  %85 = vrot.lane.b32.xlu0 %v1111_v1, %s1022_s21  ;;  %v801_v2 = vld [vmem:[#allocation7 + $0x4] ss:$12 sps:$4 sm:$0xff]   ;;  %v803_v3 = vld [vmem:[#allocation7] ss:$12 sps:$4 sm:$0xff]   ;;  %v804_v4 = vld [vmem:[#allocation7 + $0x8] ss:$12 sps:$4 sm:$0xff]  }
  0x4d   :  { %295 = vmatprep.subr.bf16.mxu0 %v801_v2  ;;  %v805_v5 = vld [vmem:[#allocation7 + $0x1c] ss:$12 sps:$4 sm:$0xff]   ;;  %v807_v6 = vld [vmem:[#allocation7 + $0x18] ss:$12 sps:$4 sm:$0xff]   ;;  %337 = vmatpush1.bf16.msra.mxu1 %v804_v4  ;;  %v808_v7 = vld [vmem:[#allocation7 + $0x20] ss:$12 sps:$4 sm:$0xff]  }
  0x4e   :  { %296 = vmatpush1.bf16.msra.mxu0 %v803_v3  ;;  %338 = vmatprep.subr.bf16.mxu1 %v1021_v0  ;;  %v809_v8 = vld [vmem:[#allocation7 + $0x34] ss:$12 sps:$4 sm:$0xff]   ;;  %v811_v9 = vld [vmem:[#allocation7 + $0x30] ss:$12 sps:$4 sm:$0xff]   ;;  %v812_v10 = vld [vmem:[#allocation7 + $0x38] ss:$12 sps:$4 sm:$0xff]  }
  0x4f   :  { %297 = vmatprep.subr.bf16.mxu0 %v805_v5  ;;  %v813_v11 = vld [vmem:[#allocation7 + $0x4c] ss:$12 sps:$4 sm:$0xff]   ;;  %v815_v12 = vld [vmem:[#allocation7 + $0x48] ss:$12 sps:$4 sm:$0xff]   ;;  %v816_v13 = vld [vmem:[#allocation7 + $0x50] ss:$12 sps:$4 sm:$0xff]  }
  0x50   :  { %v817_v14 = vld [vmem:[#allocation7 + $0x64] ss:$12 sps:$4 sm:$0xff]   ;;  %v819_v15 = vld [vmem:[#allocation7 + $0x60] ss:$12 sps:$4 sm:$0xff]   ;;  %v820_v16 = vld [vmem:[#allocation7 + $0x68] ss:$12 sps:$4 sm:$0xff]  }
  0x51   :  { %339 = vmatpush1.bf16.msra.mxu1 %v808_v7  ;;  %v821_v17 = vld [vmem:[#allocation7 + $0x7c] ss:$12 sps:$4 sm:$0xff]   ;;  %v823_v18 = vld [vmem:[#allocation7 + $0x78] ss:$12 sps:$4 sm:$0xff]   ;;  %v824_v19 = vld [vmem:[#allocation7 + $0x80] ss:$12 sps:$4 sm:$0xff]  }
  0x52   :  { %298 = vmatpush1.bf16.msra.mxu0 %v807_v6  ;;  %340 = vmatprep.subr.bf16.mxu1 %v1021_v0  ;;  %v825_v20 = vld [vmem:[#allocation7 + $0x94] ss:$12 sps:$4 sm:$0xff]   ;;  %v827_v21 = vld [vmem:[#allocation7 + $0x90] ss:$12 sps:$4 sm:$0xff]   ;;  %v828_v22 = vld [vmem:[#allocation7 + $0x98] ss:$12 sps:$4 sm:$0xff]  }
  0x53   :  { %299 = vmatprep.subr.bf16.mxu0 %v809_v8  ;;  %v829_v23 = vld [vmem:[#allocation7 + $0xac] ss:$12 sps:$4 sm:$0xff]   ;;  %v831_v24 = vld [vmem:[#allocation7 + $0xa8] ss:$12 sps:$4 sm:$0xff]   ;;  %v832_v25 = vld [vmem:[#allocation7 + $0xb0] ss:$12 sps:$4 sm:$0xff]  }
  0x54   :  { %v833_v26 = vld [vmem:[#allocation7 + $0xc4] ss:$12 sps:$4 sm:$0xff]   ;;  %v835_v27 = vld [vmem:[#allocation7 + $0xc0] ss:$12 sps:$4 sm:$0xff]   ;;  %v836_v28 = vld [vmem:[#allocation7 + $0xc8] ss:$12 sps:$4 sm:$0xff]  }
  0x55   :  { %341 = vmatpush1.bf16.msra.mxu1 %v812_v10  ;;  %v837_v29 = vld [vmem:[#allocation7 + $0xdc] ss:$12 sps:$4 sm:$0xff]   ;;  %v839_v30 = vld [vmem:[#allocation7 + $0xd8] ss:$12 sps:$4 sm:$0xff]   ;;  %v840_v31 = vld [vmem:[#allocation7 + $0xe0] ss:$12 sps:$4 sm:$0xff]  }
  0x56   :  { %300 = vmatpush1.bf16.msra.mxu0 %v811_v9  ;;  %342 = vmatprep.subr.bf16.mxu1 %v1021_v0  ;;  %vm88_vm0 = vcmask 261120   ;;  %v841_v37 = vld [vmem:[#allocation8] ss:$8 sps:$4 sm:$0xff]   ;;  %v1023_v38 = vmov 0.0   ;;  %v842_v39 = vld [vmem:[#allocation8 + $0x10] ss:$8 sps:$4 sm:$0xff]  }
  0x57   :  { %301 = vmatprep.subr.bf16.mxu0 %v813_v11  ;;  %v843_v40 = vld [vmem:[#allocation8 + $0x20] ss:$8 sps:$4 sm:$0xff]   ;;  %v844_v41 = vld [vmem:[#allocation8 + $0x30] ss:$8 sps:$4 sm:$0xff]   ;;  %vm1024_vm1 = vmmov 0   ;;  %s1025_s28 = smov [#allocation11]  }
  0x58   :  { %v845_v42 = vld [vmem:[#allocation8 + $0x40] ss:$8 sps:$4 sm:$0xff]   ;;  %v846_v43 = vld [vmem:[#allocation8 + $0x50] ss:$8 sps:$4 sm:$0xff]   ;;  %v849_v46 = vld [vmem:[#allocation8 + $0x4] ss:$8 sps:$4 sm:$0xff]  }
  0x59   :  { %343 = vmatpush1.bf16.msra.mxu1 %v816_v13  ;;  %v847_v44 = vld [vmem:[#allocation8 + $0x60] ss:$8 sps:$4 sm:$0xff]   ;;  %v848_v45 = vld [vmem:[#allocation8 + $0x70] ss:$8 sps:$4 sm:$0xff]   ;;  %v850_v47 = vld [vmem:[#allocation8 + $0x14] ss:$8 sps:$4 sm:$0xff]  }
  0x5a   :  { %302 = vmatpush1.bf16.msra.mxu0 %v815_v12  ;;  %344 = vmatprep.subr.bf16.mxu1 %v1021_v0  ;;  %v708_v48 = vld [vmem:[%s1184_s4 + $0x1] ss:$0 sm:$0xff]  ;;  %v852_v2 = vld [vmem:[#allocation8 + $0x34] ss:$8 sps:$4 sm:$0xff]   ;;  %v853_v3 = vld [vmem:[#allocation8 + $0x44] ss:$8 sps:$4 sm:$0xff]  }
  0x5b   :  { %303 = vmatprep.subr.bf16.mxu0 %v817_v14  ;;  %v854_v4 = vld [vmem:[#allocation8 + $0x54] ss:$8 sps:$4 sm:$0xff]   ;;  %v855_v5 = vld [vmem:[#allocation8 + $0x64] ss:$8 sps:$4 sm:$0xff]   ;;  %v706_v7 = vld [vmem:[%s1184_s4] ss:$0 sm:$0xff] }
  0x5c   :  { %v856_v6 = vld [vmem:[#allocation8 + $0x74] ss:$8 sps:$4 sm:$0xff]   ;;  %v718_v12 = vld [vmem:[%s1184_s4 + $0x2] ss:$0 sm:$0xff]  ;;  %s659_s29 = sshll.u32 %s1025_s28, 4  ;;  %s660_s29 = int_to_ptr.vmem [resolvable:$true] %s659_s29 }
  0x5d   :  { %345 = vmatpush1.bf16.msra.mxu1 %v820_v16  ;;  %s959_s30 = scalar_lea.vmem %s660_s29, 128  ;;  %p964_p5 = scmp.lt.s32.totalorder %s660_s29, %s660_s29 }
  0x5e   :  { %304 = vmatpush1.bf16.msra.mxu0 %v819_v15  ;;  %346 = vmatprep.subr.bf16.mxu1 %v1021_v0  ;;  %p960_p4 = scmp.ne.s32.totalorder %s660_s29, %s959_s30  ;;  %p965_p6 = scmp.lt.s32.totalorder %s959_s30, %s959_s30 }
  0x5f   :  { %305 = vmatprep.subr.bf16.mxu0 %v821_v17 }
  0x60   :  { %p966_p7 = por %p965_p6, %p964_p5 }
  0x61   :  { %347 = vmatpush1.bf16.msra.mxu1 %v824_v19 }
  0x62   :  { %306 = vmatpush1.bf16.msra.mxu0 %v823_v18  ;;  %348 = vmatprep.subr.bf16.mxu1 %v1021_v0  ;;  %p967_p8 = pnand %p966_p7, %p960_p4 }
  0x63   :  { %307 = vmatprep.subr.bf16.mxu0 %v825_v20 }
  0x65   :  { %349 = vmatpush1.bf16.msra.mxu1 %v828_v22 }
  0x66   :  { %308 = vmatpush1.bf16.msra.mxu0 %v827_v21  ;;  %350 = vmatprep.subr.bf16.mxu1 %v1021_v0 }
  0x67   :  { %309 = vmatprep.subr.bf16.mxu0 %v829_v23 }
  0x69   :  { %351 = vmatpush1.bf16.msra.mxu1 %v832_v25 }
  0x6a   :  { %310 = vmatpush1.bf16.msra.mxu0 %v831_v24  ;;  %352 = vmatprep.subr.bf16.mxu1 %v1021_v0 }
  0x6b   :  { %311 = vmatprep.subr.bf16.mxu0 %v833_v26 }
  0x6d   :  { %353 = vmatpush1.bf16.msra.mxu1 %v836_v28 }
  0x6e   :  { %312 = vmatpush1.bf16.msra.mxu0 %v835_v27  ;;  %354 = vmatprep.subr.bf16.mxu1 %v1021_v0  ;;  %v851_v0 = vld [vmem:[#allocation8 + $0x24] ss:$8 sps:$4 sm:$0xff]  }
  0x6f   :  { %313 = vmatprep.subr.bf16.mxu0 %v837_v29 }
  0x71   :  { %355 = vmatpush1.bf16.msra.mxu1 %v840_v31 }
  0x72   :  { %314 = vmatpush1.bf16.msra.mxu0 %v839_v30  ;;  %767 = vmatprep.subr.bf16.mxu1 %v1023_v38 }
  0x73   :  { %747 = vmatprep.subr.bf16.mxu0 %v1023_v38 }
  0xbe   :  { %v86_v33 = vpop.permute.xlu0 %85 }
  0xbf   :  { %v89_v34 = vsel %vm88_vm0, %v82_v32, %v86_v33  ;;  %v91_v35 = vpack.c.bf16 %v86_v33, %v86_v33 }
  0xc0   :  { %v90_v36 = vpack.c.bf16 %v89_v34, %v89_v34 }
  0xc1   :  { %704 = vmatprep.mubr.msk.bf16.mxu0 %vm88_vm0, %v91_v35  ;;  %705 = vmatprep.mubr.msk.bf16.mxu1 %vm88_vm0, %v91_v35 }
  0xc2   :  { %328 = vmatmul.mubr.bf16.vlgmr.msra.gmra.mrb[0].mxu0 %v90_v36  ;;  %369 = vmatmul.mubr.bf16.vlgmr.msra.gmra.mrb[0].mxu1 %v90_v36 }
  0xc3   :  { %748 = vmatpush3.bf16.msra.mxu0 %v841_v37  ;;  %763 = vmatprep.mubr.msk.bf16.mxu0 %vm1024_vm1, %v1023_v38 }
  0xc4   :  { %749 = vmatprep.subr.bf16.mxu0 %v1023_v38  ;;  %783 = vmatprep.mubr.msk.bf16.mxu1 %vm1024_vm1, %v1023_v38 }
  0xc5   :  { %768 = vmatpush3.bf16.msra.mxu1 %v849_v46 }
  0xc6   :  { %769 = vmatprep.subr.bf16.mxu1 %v1023_v38 }
  0xc7   :  { %750 = vmatpush3.bf16.msra.mxu0 %v842_v39 }
  0xc8   :  { %751 = vmatprep.subr.bf16.mxu0 %v1023_v38 }
  0xc9   :  { %770 = vmatpush3.bf16.msra.mxu1 %v850_v47 }
  0xca   :  { %771 = vmatprep.subr.bf16.mxu1 %v1023_v38 }
  0xcb   :  { %752 = vmatpush3.bf16.msra.mxu0 %v843_v40 }
  0xcc   :  { %753 = vmatprep.subr.bf16.mxu0 %v1023_v38 }
  0xcd   :  { %772 = vmatpush3.bf16.msra.mxu1 %v851_v0 }
  0xce   :  { %773 = vmatprep.subr.bf16.mxu1 %v1023_v38 }
  0xcf   :  { %754 = vmatpush3.bf16.msra.mxu0 %v844_v41 }
  0xd0   :  { %755 = vmatprep.subr.bf16.mxu0 %v1023_v38 }
  0xd1   :  { %774 = vmatpush3.bf16.msra.mxu1 %v852_v2 }
  0xd2   :  { %775 = vmatprep.subr.bf16.mxu1 %v1023_v38 }
  0xd3   :  { %756 = vmatpush3.bf16.msra.mxu0 %v845_v42 }
  0xd4   :  { %757 = vmatprep.subr.bf16.mxu0 %v1023_v38 }
  0xd5   :  { %776 = vmatpush3.bf16.msra.mxu1 %v853_v3 }
  0xd6   :  { %777 = vmatprep.subr.bf16.mxu1 %v1023_v38 }
  0xd7   :  { %758 = vmatpush3.bf16.msra.mxu0 %v846_v43 }
  0xd8   :  { %759 = vmatprep.subr.bf16.mxu0 %v1023_v38 }
  0xd9   :  { %778 = vmatpush3.bf16.msra.mxu1 %v854_v4 }
  0xda   :  { %779 = vmatprep.subr.bf16.mxu1 %v1023_v38 }
  0xdb   :  { %760 = vmatpush3.bf16.msra.mxu0 %v847_v44 }
  0xdc   :  { %761 = vmatprep.subr.bf16.mxu0 %v1023_v38 }
  0xdd   :  { %780 = vmatpush3.bf16.msra.mxu1 %v855_v5 }
  0xde   :  { %781 = vmatprep.subr.bf16.mxu1 %v1023_v38 }
  0xdf   :  { %762 = vmatpush3.bf16.msra.mxu0 %v848_v45 }
  0xe1   :  { %782 = vmatpush3.bf16.msra.mxu1 %v856_v6 }
 0x195   :  { %v329_v49 = vpop.f32.mrb[0].mxu0  ;;  %v370_v50 = vpop.f32.mrb[0].mxu1 }
 0x196   :  { %v331_v51 = vpop.f32.mrb[1].mxu0  ;;  %v372_v52 = vpop.f32.mrb[1].mxu1  ;;  %v383_v8 = vadd.f32 %v706_v7, %v329_v49 }
 0x197   :  { %v397_v53 = vadd.f32 %v708_v48, %v331_v51  ;;  %v333_v54 = vpop.f32.mrb[2].mxu0  ;;  %v373_v55 = vpop.f32.mrb[2].mxu1 }
 0x198   :  { %v334_v56 = vpop.f32.mrb[3].mxu0  ;;  %v374_v57 = vpop.f32.mrb[3].mxu1  ;;  %v707_v9 = vmul.f32 -1.442695, %v383_v8 }
 0x199   :  { %v709_v58 = vmul.f32 -1.442695, %v397_v53 }
 0x19b   :  { %857 = vpow2.f32 %v709_v58 }
 0x1a5   :  { %v858_v59 = vpop.eup %857 }
 0x1a6   :  { %v401_v60 = vadd.f32 1.0, %v858_v59 }
 0x1a8   :  { %859 = vrcp.f32 %v401_v60 }
 0x1a9   :  { %861 = vpow2.f32 %v707_v9 }
 0x1b2   :  { %v860_v61 = vpop.eup %859 }
 0x1b3   :  { %v404_v62 = vmul.f32 %v860_v61, %v1111_v1  ;;  %v862_v10 = vpop.eup %861 }
 0x1b4   :  { %v387_v16 = vadd.f32 1.0, %v862_v10 }
 0x1b5   :  { %v405_v63 = vpack.c.bf16 %v404_v62, %v404_v62 }
 0x1b7   :  { %764 = vmatmul.mubr.bf16.vlgmr.msra.gmra.mrb[4].mxu0 %v405_v63 }
 0x28a   :  { %v504_v11 = vpop.f32.mrb[4].mxu0 }
 0x28b   :  { %v510_v13 = vadd.f32 %v504_v11, %v370_v50  ;;  %v765_v14 = vpop.f32.mrb[5].mxu0 }
 0x28c   :  { %v507_v15 = vpop.f32.mrb[6].mxu0 }
 0x28d   :  { %v518_v17 = vadd.f32 %v718_v12, %v510_v13  ;;  %v766_v18 = vpop.f32.mrb[7].mxu0 }
 0x28f   :  { %863 = vtanh.f32 %v518_v17 }
 0x290   :  { %865 = vrcp.f32 %v387_v16 }
 0x299   :  { %v864_v19 = vpop.eup %863 }
 0x29a   :  { %v520_v20 = vsub.f32 %v864_v19, %v1111_v1  ;;  %v866_v21 = vpop.eup %865 }
 0x29c   :  { %v521_v22 = vmul.f32 %v866_v21, %v520_v20 }
 0x29e   :  { %v522_v23 = vadd.f32 %v521_v22, %v1111_v1 }
 0x2a0   :  { %v523_v24 = vpack.c.bf16 %v522_v23, %v522_v23  ;;  %641 = vst [vmem:[#allocation11] sm:$0xff] %v522_v23 }
 0x2a2   :  { %784 = vmatmul.mubr.bf16.vlgmr.msra.gmra.mrb[4].mxu1 %v523_v24 }
 0x2a3   :  { %970 = shalt.err (!%p967_p8)
}
 0x2a4   :  { %s971_s7 = scalar_lea.hbm %s1186_s6, 128 }
 0x2a5   :  { %p972_p9 = scmp.ne.s32.totalorder %s1186_s6, %s971_s7  ;;  %p975_p10 = scmp.lt.u32.totalorder %s971_s7, %s1186_s6 }
 0x2a7   :  { %p977_p11 = pnand %p975_p10, %p972_p9 }
 0x2a9   :  { %980 = shalt.err (!%p977_p11)
}
 0x2aa   :  { %662 = dma.vmem_to_hbm [thread:$0]  %s660_s29, 128, %s1186_s6, [#allocation12]   ;;  %v719_v1 = vld [vmem:[%s1184_s4 + $0x3] ss:$0 sm:$0xff] }
 0x2ab   :  { %s1026_s16 = smov [#allocation10]  }
 0x2ac   :  { %s649_s17 = sshll.u32 %s1026_s16, 4  ;;  %s650_s17 = int_to_ptr.vmem [resolvable:$true] %s649_s17 }
 0x2ad   :  { %s981_s6 = scalar_lea.vmem %s650_s17, 128  ;;  %p986_p13 = scmp.lt.s32.totalorder %s650_s17, %s650_s17 }
 0x2ae   :  { %p982_p12 = scmp.ne.s32.totalorder %s650_s17, %s981_s6  ;;  %p987_p0 = scmp.lt.s32.totalorder %s981_s6, %s981_s6 }
 0x2b0   :  { %p988_p1 = por %p987_p0, %p986_p13 }
 0x2b2   :  { %p989_p2 = pnand %p988_p1, %p982_p12 }
 0x375   :  { %v629_v25 = vpop.f32.mrb[4].mxu1 }
 0x376   :  { %v630_v26 = vadd.f32 %v719_v1, %v629_v25  ;;  %v785_v27 = vpop.f32.mrb[5].mxu1 }
 0x377   :  { %v632_v28 = vpop.f32.mrb[6].mxu1 }
 0x378   :  { %v728_v29 = vmul.f32 -1.442695, %v630_v26  ;;  %v786_v30 = vpop.f32.mrb[7].mxu1 }
 0x37a   :  { %867 = vpow2.f32 %v728_v29 }
 0x384   :  { %v868_v31 = vpop.eup %867 }
 0x385   :  { %v638_v32 = vadd.f32 1.0, %v868_v31 }
 0x387   :  { %869 = vrcp.f32 %v638_v32 }
 0x391   :  { %v870_v33 = vpop.eup %869 }
 0x392   :  { %642 = vst [vmem:[#allocation10] sm:$0xff] %v870_v33 }
 0x393   :  { %992 = shalt.err (!%p989_p2)
}
 0x394   :  { %s993_s2 = scalar_lea.hbm %s1185_s5, 128 }
 0x395   :  { %p994_p3 = scmp.ne.s32.totalorder %s1185_s5, %s993_s2  ;;  %p997_p4 = scmp.lt.u32.totalorder %s993_s2, %s1185_s5 }
 0x397   :  { %p999_p5 = pnand %p997_p4, %p994_p3 }
 0x399   :  { %1002 = shalt.err (!%p999_p5)
}
 0x39a   :  { %652 = dma.vmem_to_hbm [thread:$0]  %s650_s17, 128, %s1185_s5, [#allocation4]  }
 0x39b   :  { %1009 = dma.done.wait [#allocation4], 128  }
 0x39c   :  { %1010 = vsyncadd [#allocation4], 4294967168 }
 0x39d   :  { %1011 = dma.done.wait [#allocation12], 128  }
 0x39e   :  { %1012 = vsyncadd [#allocation12], 4294967168 }
 0x39f   :  { %669 = vsyncpa [#allocation3], 1 }
 0x3a0   :  { %670 = vsyncpa [#allocation6], 1 }
 0x3a1   :  { %671 = vsyncpa [#allocation9], 1 }
 0x3a2   :  { %672 = vsyncpa [#allocation4], 1 }
 0x3a3   :  { %673 = vsyncpa [#allocation12], 1 }

</bundles_post_ra>
